<compile_context>
chip_gen: v7x
topology: tpu7x:2x2x1
jax: 0.10.0
libtpu: 0.0.40
codegen_flags: <defaults>
</compile_context>

<pallas_src>
import functools
import math

import jax
import jax.numpy as jnp
from jax import lax
from jax.experimental import pallas as pl
from jax.experimental.pallas import tpu as pltpu


def _round_up(x, m):
    return (x + m - 1) // m * m


def _conv_kernel(lhs_ref, w_ref, b_ref, o_ref, *acc, n_groups):
    """One (row-block, cout-block, tap-group) grid step.

    lhs_ref: (tile_r, Kp)         packed-tap activations for this tap group
    w_ref  : (Kp, tile_cout)      packed-tap weights for this tap group
    b_ref  : (1, tile_cout)       f32 bias
    o_ref  : (tile_r, tile_cout)  output block
    acc[0] : (tile_r, tile_cout)  f32 accumulator scratch (only when n_groups>1)
    """
    d = jnp.dot(lhs_ref[...], w_ref[...], preferred_element_type=jnp.float32)

    if n_groups == 1:
        # No reduction axis: single dot, write the output directly.
        o_ref[...] = (d + b_ref[...]).astype(o_ref.dtype)
        return

    acc_ref = acc[0]
    g = pl.program_id(2)

    @pl.when(g == 0)
    def _init():
        acc_ref[...] = d + b_ref[...]          # fold bias into the first step

    @pl.when(jnp.logical_and(g != 0, g != n_groups - 1))
    def _accum():
        acc_ref[...] += d                      # one accumulator RMW per step

    @pl.when(g == n_groups - 1)
    def _finalize():
        o_ref[...] = (acc_ref[...] + d).astype(o_ref.dtype)   # last step: no acc write


def downsample_conv2d(x_nchw, weight, bias, *, compute_dtype=jnp.bfloat16,
                      tile_rows_target=2048, tap_groups=None):
    """Strided 3x3 conv, stride=2, padding=1 (PyTorch Conv2d semantics).

    x_nchw: (N, Cin, H, W)   weight: (Cout, Cin, 3, 3)   bias: (Cout,)
    returns: (N, Cout, OH, OW) with OH = (H-1)//2 + 1, OW = (W-1)//2 + 1
    """
    N, C, H, W = x_nchw.shape
    Cout = weight.shape[0]
    assert weight.shape == (Cout, C, 3, 3)
    OH = (H - 1) // 2 + 1
    OW = (W - 1) // 2 + 1
    P = N * OH * OW                      # total number of output pixels
    out_dtype = x_nchw.dtype
    itemsize = jnp.dtype(compute_dtype).itemsize
    out_itemsize = jnp.dtype(out_dtype).itemsize

    # ---- tap grouping: pack filter taps along the contraction axis ----------
    if tap_groups is None:
        tap_groups = 1 if _round_up(9 * C, 128) <= 2048 else 3
    assert tap_groups in (1, 3)
    if tap_groups == 1:
        group_taps = [[(kh, kw) for kh in range(3) for kw in range(3)]]
    else:
        group_taps = [[(kh, kw) for kw in range(3)] for kh in range(3)]
    G = len(group_taps)
    T = len(group_taps[0])
    K_raw = T * C
    Kp = _round_up(K_raw, 128)           # MXU / lane-aligned contraction depth
    Coutp = _round_up(Cout, 128)         # lane-dense output stores

    # ---- generation-aware VMEM budget ----------------------------------------
    try:
        vmem_cap = int(pltpu.get_tpu_info().vmem_capacity_bytes)
    except Exception:
        vmem_cap = 0
    if vmem_cap <= 0:
        vmem_cap = 64 * 1024 * 1024      # conservative default (v7x-sized)
    vmem_limit = min(vmem_cap * 3 // 4, 96 * 1024 * 1024)   # 96MiB v5e/v6e, 48MiB v7x
    vmem_budget = vmem_limit * 3 // 5    # headroom for Mosaic internal scratch

    # Cout tile: largest multiple of 128 dividing Coutp, capped at 512.
    tile_cout = Coutp
    if tile_cout > 512:
        tile_cout = 512
        while Coutp % tile_cout:
            tile_cout -= 128
    num_cout_blocks = Coutp // tile_cout

    def vmem_est(tr):
        lhs = 2 * tr * Kp * itemsize                 # double-buffered LHS block
        wgt = 2 * Kp * tile_cout * itemsize          # double-buffered weight block
        out = 2 * tr * tile_cout * out_itemsize      # double-buffered output block
        acc = tr * tile_cout * 4 if G > 1 else 0     # f32 accumulator scratch
        bia = 2 * tile_cout * 4
        return lhs + wgt + out + acc + bia

    tile_r = min(_round_up(P, 8), _round_up(tile_rows_target, 8))
    while tile_r > 8 and vmem_est(tile_r) > vmem_budget:
        tile_r = _round_up(tile_r // 2, 8)
    # Megacore occupancy (v7x has 2 TensorCores): keep >=2 parallel blocks.
    if num_cout_blocks == 1 and P >= 16:
        tile_r = min(tile_r, _round_up((P + 1) // 2, 8))

    P_pad = _round_up(P, tile_r)
    num_row_blocks = P_pad // tile_r

    # ---- glue: NCHW -> NHWC, zero-pad, tap extraction & K-packing ------------
    # TODO(synk): for bandwidth-bound shapes, accept NHWC upstream and/or gather
    #   the taps with manual strided DMA (memory_space=pl.ANY) inside the kernel.
    x = jnp.transpose(x_nchw, (0, 2, 3, 1)).astype(compute_dtype)   # NHWC
    pad_b = max(0, 2 * OH - H)            # extra bottom pad needed by the last row tap
    pad_r = max(0, 2 * OW - W)            # extra right  pad needed by the last col tap
    xp = jnp.pad(x, ((0, 0), (1, pad_b), (1, pad_r), (0, 0)))

    def tap(kh, kw):                      # (N, OH, OW, C) strided view of padded input
        return xp[:, kh:kh + 2 * OH:2, kw:kw + 2 * OW:2, :]

    lhs = jnp.stack(
        [jnp.concatenate([tap(kh, kw) for (kh, kw) in grp], axis=-1).reshape(P, K_raw)
         for grp in group_taps], axis=0)                              # (G, P, K_raw)
    lhs = jnp.pad(lhs, ((0, 0), (0, P_pad - P), (0, Kp - K_raw)))

    # weight (Cout, Cin, 3, 3) -> per-group (Kp, Coutp) matrices, same tap order
    w_t = jnp.transpose(weight, (2, 3, 1, 0))                         # (3, 3, C, Cout)
    w = jnp.stack(
        [jnp.concatenate([w_t[kh, kw] for (kh, kw) in grp], axis=0)
         for grp in group_taps], axis=0)                              # (G, K_raw, Cout)
    w = jnp.pad(w, ((0, 0), (0, Kp - K_raw), (0, Coutp - Cout))).astype(compute_dtype)
    b = jnp.pad(bias, (0, Coutp - Cout)).reshape(1, Coutp).astype(jnp.float32)

    scratch_shapes = []
    if G > 1:
        scratch_shapes = [pltpu.VMEM((tile_r, tile_cout), jnp.float32)]

    kernel = functools.partial(_conv_kernel, n_groups=G)
    out_padded = pl.pallas_call(
        kernel,
        out_shape=jax.ShapeDtypeStruct((P_pad, Coutp), out_dtype),
        grid_spec=pltpu.PrefetchScalarGridSpec(
            num_scalar_prefetch=0,
            grid=(num_row_blocks, num_cout_blocks, G),   # (pixels, cout, tap-groups)
            in_specs=[
                pl.BlockSpec((None, tile_r, Kp), lambda i, j, g: (g, i, 0)),
                pl.BlockSpec((None, Kp, tile_cout), lambda i, j, g: (g, 0, j)),
                pl.BlockSpec((1, tile_cout), lambda i, j, g: (0, j)),
            ],
            out_specs=pl.BlockSpec((tile_r, tile_cout), lambda i, j, g: (i, j)),
            scratch_shapes=scratch_shapes,
        ),
        compiler_params=pltpu.CompilerParams(
            dimension_semantics=("parallel", "parallel", "arbitrary"),
            vmem_limit_bytes=vmem_limit,
        ),
    )(lhs, w, b)

    out = out_padded[:P, :Cout].reshape(N, OH, OW, Cout)
    return jnp.transpose(out, (0, 3, 1, 2))                           # back to NCHW


if __name__ == "__main__":
    key = jax.random.PRNGKey(0)
    kx, kw, kb = jax.random.split(key, 3)

    # Downsample(channels=4, use_conv=True, dims=2, out_channels=4)
    N, C, H, W = 2, 4, 16, 16
    Cout = 4

    x = jax.random.normal(kx, (N, C, H, W), dtype=jnp.float32)
    fan_in = C * 3 * 3
    bound = 1.0 / math.sqrt(fan_in)
    weight = jax.random.uniform(kw, (Cout, C, 3, 3), minval=-bound, maxval=bound,
                                dtype=jnp.float32)
    bias = jax.random.uniform(kb, (Cout,), minval=-bound, maxval=bound,
                              dtype=jnp.float32)

    # reference: same semantics as nn.Conv2d(kernel=3, stride=2, padding=1)
    ref = lax.conv_general_dilated(
        x, weight, window_strides=(2, 2), padding=((1, 1), (1, 1)),
        dimension_numbers=("NCHW", "OIHW", "NCHW"),
    ) + bias.reshape(1, -1, 1, 1)

    # f32 compute, single-group (9-tap packed) path: validates indexing exactly.
    out_f32 = jax.block_until_ready(
        downsample_conv2d(x, weight, bias, compute_dtype=jnp.float32))
    assert out_f32.shape == (N, Cout, H // 2, W // 2), out_f32.shape
    err_f32 = float(jnp.max(jnp.abs(out_f32 - ref)))
    assert err_f32 < 1e-4, err_f32

    # f32 compute, forced 3-group path: validates the kh-reduction accumulator.
    out_g3 = jax.block_until_ready(
        downsample_conv2d(x, weight, bias, compute_dtype=jnp.float32, tap_groups=3))
    err_g3 = float(jnp.max(jnp.abs(out_g3 - ref)))
    assert err_g3 < 1e-4, err_g3

    # bf16 compute path (default; MXU-native) with f32 accumulation.
    out_bf16 = jax.block_until_ready(downsample_conv2d(x, weight, bias))
    assert out_bf16.shape == (N, Cout, H // 2, W // 2), out_bf16.shape
    err_bf16 = float(jnp.max(jnp.abs(out_bf16 - ref)))
    assert err_bf16 < 3e-2, err_bf16

    print("KERNEL_OK")
</pallas_src>

<mosaic_0001>
module attributes {stable_mosaic.version = 11 : i64} {
  func.func @_conv_kernel(%arg0: i32, %arg1: i32, %arg2: i32, %arg3: memref<1x64x128xf32, #tpu.memory_space<vmem>>, %arg4: memref<1x128x128xf32, #tpu.memory_space<vmem>>, %arg5: memref<1x128xf32, #tpu.memory_space<vmem>>, %arg6: memref<64x128xf32, #tpu.memory_space<vmem>>) attributes {dimension_semantics = [#tpu.dimension_semantics<parallel>, #tpu.dimension_semantics<parallel>, #tpu.dimension_semantics<arbitrary>], iteration_bounds = array<i64: 2, 1, 1>, scalar_prefetch = 0 : i64, scratch_operands = 0 : i64, tpu.core_type = #tpu.core_type<tc>, window_params = [{transform_indices = @transform_0, window_bounds = array<i64: 1, 64, 128>}, {transform_indices = @transform_1, window_bounds = array<i64: 1, 128, 128>}, {transform_indices = @transform_2, window_bounds = array<i64: 1, 128>}, {transform_indices = @transform_3, window_bounds = array<i64: 64, 128>}]} {
    %c0 = arith.constant 0 : index
    %c0_0 = arith.constant 0 : index
    %c0_1 = arith.constant 0 : index
    %0 = vector.load %arg3[%c0, %c0_0, %c0_1] : memref<1x64x128xf32, #tpu.memory_space<vmem>>, vector<1x64x128xf32>
    %1 = vector.shape_cast %0 : vector<1x64x128xf32> to vector<64x128xf32>
    %c0_2 = arith.constant 0 : index
    %c0_3 = arith.constant 0 : index
    %c0_4 = arith.constant 0 : index
    %2 = vector.load %arg4[%c0_2, %c0_3, %c0_4] : memref<1x128x128xf32, #tpu.memory_space<vmem>>, vector<1x128x128xf32>
    %3 = vector.shape_cast %2 : vector<1x128x128xf32> to vector<128x128xf32>
    %cst = arith.constant dense<0.000000e+00> : vector<64x128xf32>
    %4 = tpu.matmul %1, %3, %cst {dimension_numbers = #tpu.dot_dimension_numbers<[1], [0], [0], [1], [0, 0, 1, 1], [], []>} : vector<64x128xf32>, vector<128x128xf32>, vector<64x128xf32> -> vector<64x128xf32>
    %c0_5 = arith.constant 0 : index
    %c0_6 = arith.constant 0 : index
    %5 = vector.load %arg5[%c0_5, %c0_6] : memref<1x128xf32, #tpu.memory_space<vmem>>, vector<1x128xf32>
    %6 = vector.broadcast %5 : vector<1x128xf32> to vector<64x128xf32>
    %7 = arith.addf %4, %6 : vector<64x128xf32>
    %c0_7 = arith.constant 0 : index
    %c0_8 = arith.constant 0 : index
    %8 = vector.load %arg6[%c0_7, %c0_8] : memref<64x128xf32, #tpu.memory_space<vmem>>, vector<64x128xf32>
    tpu.vector_store %arg6[%c0_7, %c0_8], %7 {strides = array<i32>} : memref<64x128xf32, #tpu.memory_space<vmem>>, vector<64x128xf32>,
    return
  }
  func.func @transform_0(%arg0: i32, %arg1: i32, %arg2: i32) -> (i32, i32, i32) {
    %c0_i32 = arith.constant 0 : i32
    %c0_i32_0 = arith.constant 0 : i32
    return %arg2, %arg0, %c0_i32 : i32, i32, i32
  }
  func.func @transform_1(%arg0: i32, %arg1: i32, %arg2: i32) -> (i32, i32, i32) {
    %c0_i32 = arith.constant 0 : i32
    %c0_i32_0 = arith.constant 0 : i32
    return %arg2, %c0_i32, %arg1 : i32, i32, i32
  }
  func.func @transform_2(%arg0: i32, %arg1: i32, %arg2: i32) -> (i32, i32) {
    %c0_i32 = arith.constant 0 : i32
    %c0_i32_0 = arith.constant 0 : i32
    return %c0_i32, %arg1 : i32, i32
  }
  func.func @transform_3(%arg0: i32, %arg1: i32, %arg2: i32) -> (i32, i32) {
    %c0_i32 = arith.constant 0 : i32
    return %arg0, %arg1 : i32, i32
  }
}

</mosaic_0001>

<bundles_post_ra>
// kernel: tpu_custom_call.1
= control target key start
LH: loop header
LB: loop body
LE: loop exit
PB: predicated region body
PF: predicated region fallthrough
CT: control target
= control target key end

     0   :  { %8 = vsyncpa [#allocation3], 0  ;;  %s1159_s0 = inlined_call_operand.hbm [shape: f32[1,128,128], index: 0, kind: input, shape index: {}]   ;;  %s1160_s1 = inlined_call_operand.hbm [shape: f32[1,128,128], index: 1, kind: input, shape index: {}]   ;;  %s1161_s2 = inlined_call_operand.vmem [shape: f32[1,128], index: 2, kind: input, shape index: {}]   ;;  %s1162_s3 = inlined_call_operand.hbm [shape: f32[128,128], index: 3, kind: output, shape index: {}]  }
   0x1   :  { %10 = vsyncpa [#allocation3 + $0x1], 0 }
   0x2   :  { %11 = vsyncpa [#allocation6], 0 }
   0x3   :  { %12 = vsyncpa [#allocation4], 0 }
   0x4   :  { %14 = vsyncpa [#allocation4 + $0x1], 0  ;;  %s917_s12 = smov 0   ;;  %s919_s13 = smov 0  }
   0x5   :  { %s921_s14 = smov 0   ;;  %s923_s15 = smov 0  }
   0x6   :  { %s925_s16 = smov 0   ;;  %s927_s17 = smov 0  }
   0x7 LB: > { %s530_s18 = sadd.s32 4294967295, %s888_s17   ;;  %s531_s19 = sadd.s32 4294967294, %s888_s17   ;;  %s888_s17 = sphi %s927_s17, %s20_s17   ;;  %s884_s16 = sphi %s925_s16, %s1186_s16   ;;  %s880_s15 = sphi %s923_s15, %s1185_s15   ;;  %s876_s14 = sphi %s921_s14, %s1184_s14   ;;  %s872_s13 = sphi %s919_s13, %s1183_s13   ;;  %s868_s12 = sphi %s917_s12, %s1182_s12  }
   0x8   : > { %p61_p0 = scmp.ne.s32.totalorder %s872_s13, %s868_s12  ;;  %p951_p1 = scmp.eq.s32.totalorder %s530_s18, 0 }
   0x9   : > { %p955_p2 = scmp.eq.s32.totalorder %s530_s18, 1  ;;  %p147_p3 = scmp.eq.s32.totalorder %s531_s19, 1 }
   0xa   : > { %s1167_s20 = scalar_select %p951_p1, 1, 0 }
   0xb   : > { %s1168_s21 = scalar_select %p955_p2, 1, 0 }
   0xc   : > { %p961_p4 = por %p951_p1, %p61_p0  ;;  %p532_p5 = scmp.ge.s32.totalorder %s888_s17, 1 }
   0xd   : > { %p966_p6 = por %p147_p3, %p61_p0  ;;  %p154_p7 = scmp.lt.s32.totalorder %s888_s17, 3 }
   0xe   : > { %s1169_s22 = scalar_select %p961_p4, 1, 0 }
   0xf   : > { %s1170_s23 = scalar_select %p966_p6, 1, 0 }
  0x10   : > { %p971_p8 = pnand %p532_p5, %p154_p7  ;;  %s890_s25 = smov [#allocation5]  }
  0x11   : > { %s170_s26 = sshll.u32 %s890_s25, 4  ;;  %s39_s28 = sadd.s32 1, %s884_s16  ;;  %s171_s26 = int_to_ptr.vmem [resolvable:$true] %s170_s26 }
  0x12   : > { %s1171_s24 = scalar_select %p971_p8, 1, 0 }
  0x13   : > { %p675_p9 = pneg %p971_p8  ;;  %s744_s4 = scalar_lea.hbm %s1160_s1, 2048 }
  0x14   : > { %p745_p12 = scmp.ne.s32.totalorder %s1160_s1, %s744_s4  ;;  %p751_p5 = scmp.lt.u32.totalorder %s744_s4, %s1160_s1 }
  0x15   : > { %p980_p11 = pnand %p675_p9, %p951_p1 }
  0x17   : > { %p746_p13 = pneg %p980_p11 }
  0x19   : > { %p747_p0 = pnand %p746_p13, %p745_p12 }
  0x1b   : > { %p748_p3 = pneg %p747_p0 }
  0x1d   : > { %p753_p7 = pnand %p751_p5, %p748_p3 }
  0x1f   : > { %756 = shalt.err (!%p753_p7)
}
  0x20   : > { %s757_s9 = scalar_lea.vmem %s171_s26, 2048  ;;  %p765_p1 = scmp.lt.s32.totalorder %s171_s26, %s171_s26 }
  0x21   : > { %p758_p9 = scmp.ne.s32.totalorder %s171_s26, %s757_s9  ;;  %p766_p4 = scmp.lt.s32.totalorder %s757_s9, %s757_s9 }
  0x23   : > { %p760_p10 = pnand %p758_p9, %p746_p13  ;;  %p767_p8 = por %p766_p4, %p765_p1 }
  0x25   : > { %p761_p6 = pneg %p760_p10 }
  0x27   : > { %p768_p2 = pnand %p767_p8, %p761_p6 }
  0x29   : > { %771 = shalt.err (!%p768_p2)
}
  0x2a   : > { %s891_s10 = smov 128   ;;  %s892_s11 = smov 8  }
  0x2b   : > { %678 = dma.hbm_to_vmem [thread:$0]  (!%p980_p11), %s1160_s1, 2048, %s171_s26, [#allocation6], %s891_s10, %s891_s10, %s892_s11  }
  0x2c   : > { %p41_p1 = scmp.ge.s32.totalorder %s39_s28, 2  ;;  %s48_s25 = sadd.s32 1, %s876_s14 }
  0x2d   : > { %p55_p2 = scmp.ne.s32.totalorder %s876_s14, %s872_s13  ;;  %p56_p4 = scmp.eq.s32.totalorder %s888_s17, 0 }
  0x2e   : > { %s1188_s28 = smov (%p41_p1, %s39_s28), 0  ;;  %p1174_p8 = scmp.ne.s32.totalorder %s1168_s21, 0 }
  0x2f   : > { %p1010_p6 = por %p56_p4, %p55_p2  ;;  %s44_s30 = ssub.s32 %s884_s16, %s1188_s28 }
  0x30   : > { %p1016_p10 = por %p1174_p8, %p55_p2  ;;  %p688_p12 = scmp.lt.s32.totalorder %s888_s17, 2 }
  0x31   : > { %p46_p11 = scmp.eq.s32.totalorder %s44_s30, 0  ;;  %s190_s26 = sand.u32 1, %s876_s14  }
  0x32   : > { %s536_s4 = sshll.u32 %s190_s26, 6  ;;  %s549_s6 = sshll.u32 %s884_s16, 10 }
  0x33   : > { %s1025_s5 = scalar_select %p46_p11, %s876_s14, %s48_s25  }
  0x34   : > { %s1031_s9 = scalar_lea.hbm %s1159_s0, %s549_s6  ;;  %s194_s21 = scalar_lea.vmem [#allocation2], %s536_s4 }
  0x35   : > { %s203_s18 = sshll.u32 %s194_s21, 4  ;;  %p1037_p13 = pnand %p688_p12, %p1010_p6  ;;  %s1033_s18 = int_to_ptr.vmem [resolvable:$true] %s203_s18 }
  0x36   : > { %s1041_s25 = scalar_lea.sflag [#allocation3], %s190_s26  ;;  %s772_s30 = scalar_lea.hbm %s1031_s9, 1024 }
  0x37   : > { %p773_p0 = scmp.ne.s32.totalorder %s1031_s9, %s772_s30  ;;  %p774_p3 = pneg %p1037_p13 }
  0x38   : > { %s777_s29 = scalar_lea.hbm %s1159_s0, 2048  ;;  %p778_p9 = scmp.lt.u32.totalorder %s1031_s9, %s1159_s0 }
  0x39   : > { %p775_p5 = pnand %p774_p3, %p773_p0  ;;  %p779_p1 = scmp.lt.u32.totalorder %s777_s29, %s772_s30 }
  0x3a   : > { %p781_p4 = scmp.lt.u32.totalorder %s772_s30, %s1031_s9 }
  0x3b   : > { %p776_p7 = pneg %p775_p5  ;;  %p780_p2 = por %p779_p1, %p778_p9 }
  0x3d   : > { %p782_p6 = por %p781_p4, %p780_p2 }
  0x3f   : > { %p783_p8 = pnand %p782_p6, %p776_p7 }
  0x41   : > { %786 = shalt.err (!%p783_p8)
}
  0x42   : > { %s787_s26 = scalar_lea.vmem %s1033_s18, 1024  ;;  %s893_s21 = smov [#allocation2]  }
  0x43   : > { %p788_p12 = scmp.ne.s32.totalorder %s1033_s18, %s787_s26  ;;  %s792_s4 = sshll.u32 %s893_s21, 4  ;;  %s793_s4 = int_to_ptr.vmem [resolvable:$false] %s792_s4 }
  0x44   : > { %s794_s6 = scalar_lea.vmem %s793_s4, 2048  ;;  %p795_p5 = scmp.lt.s32.totalorder %s1033_s18, %s793_s4 }
  0x45   : > { %p790_p11 = pnand %p788_p12, %p774_p3  ;;  %p796_p9 = scmp.lt.s32.totalorder %s794_s6, %s787_s26 }
  0x47   : > { %p791_p0 = pneg %p790_p11  ;;  %p797_p1 = por %p796_p9, %p795_p5 }
  0x49   : > { %p798_p2 = pnand %p797_p1, %p791_p0 }
  0x4b   : > { %801 = shalt.err (!%p798_p2)
}
  0x4c   : > { %682 = dma.hbm_to_vmem [thread:$0]  (!%p1037_p13), %s1031_s9, 1024, %s1033_s18, %s1041_s25, %s891_s10, %s891_s10, %s892_s11  }
  0x4d   : > { %p1177_p3 = scmp.ne.s32.totalorder %s1171_s24, 0 }
  0x4e   : > { %s1075_s30 = sand.u32 (!%p1177_p3), 1, %s872_s13   ;;  %p1178_p7 = scmp.ne.s32.totalorder (!%p1177_p3), %s1169_s22, 0 }
  0x4f   : > { %215 = sbr.rel (%p1177_p3) target bundleno = 359 (0x167), region = 32  ;;  %s540_s29 = sshll.u32 (!%p1177_p3), %s1075_s30, 6 }
  0x50   : > { %s218_s7 = scalar_lea.sflag (!%p1177_p3), [#allocation3], %s1075_s30  ;;  %s1081_s19 = scalar_lea.vmem (!%p1177_p3), [#allocation2], %s540_s29 }
  0x56   : > { %855 = dma.done.wait (%p1178_p7), %s218_s7, 1024  }
  0x57   : > { %857 = vsyncadd (%p1178_p7), %s218_s7, 4294966272  ;;  %p1179_p13 = scmp.ne.s32.totalorder %s1167_s20, 0 }
  0x59   : > { %859 = dma.done.wait (%p1179_p13), [#allocation6], 2048  }
  0x5a   : > { %861 = vsyncadd (%p1179_p13), [#allocation6], 4294965248  ;;  %v264_v0 = vld [vmem:[#allocation5] sm:$0xff]  ;;  %v265_v1 = vld [vmem:[#allocation5 + $0x8] sm:$0xff]  ;;  %s250_s24 = scalar_lea.vmem [#allocation7], %s540_s29  ;;  %s550_s11 = sshll.u32 %s880_s15, 10 }
  0x5b   : > { %v266_v2 = vld [vmem:[#allocation5 + $0x10] sm:$0xff]  ;;  %v619_v3 = vpack.c.bf16 %v265_v1, %v264_v0  ;;  %v267_v4 = vld [vmem:[#allocation5 + $0x18] sm:$0xff]  ;;  %v268_v6 = vld [vmem:[#allocation5 + $0x20] sm:$0xff]  ;;  %s415_s10 = sshll.u32 %s250_s24, 4  ;;  %s1110_s15 = scalar_lea.hbm %s1162_s3, %s550_s11  ;;  %s1105_s10 = int_to_ptr.vmem [resolvable:$true] %s415_s10 }
  0x5c   : > { %v623_v5 = vpack.c.bf16 %v267_v4, %v266_v2  ;;  %v269_v7 = vld [vmem:[#allocation5 + $0x28] sm:$0xff]  ;;  %v256_v9 = vld [vmem:[%s1081_s19] sm:$0xff]  ;;  %v270_v11 = vld [vmem:[#allocation5 + $0x30] sm:$0xff]  ;;  %s401_s25 = scalar_lea.sflag [#allocation4], %s1075_s30  ;;  %s802_s8 = scalar_lea.vmem %s1105_s10, 1024 }
  0x5d   : > { %620 = vmatprep.subr.bf16.mxu0 %v619_v3  ;;  %651 = vmatprep.subr.bf16.mxu1 %v619_v3  ;;  %v627_v8 = vpack.c.bf16 %v269_v7, %v268_v6  ;;  %v260_v10 = vld [vmem:[%s1081_s19 + $0x20] sm:$0xff]  ;;  %v271_v12 = vld [vmem:[#allocation5 + $0x38] sm:$0xff]  ;;  %v273_v15 = vld [vmem:[#allocation5 + $0x48] sm:$0xff]  ;;  %p803_p4 = scmp.ne.s32.totalorder %s1105_s10, %s802_s8  ;;  %s894_s26 = smov [#allocation7]  }
  0x5e   : > { %622 = vmatpush3.bf16.msra.mxu0 %v619_v3  ;;  %659 = vmatpush3.bf16.msra.mxu1 %v619_v3  ;;  %v631_v13 = vpack.c.bf16 %v271_v12, %v270_v11  ;;  %v272_v14 = vld [vmem:[#allocation5 + $0x40] sm:$0xff]  ;;  %v274_v17 = vld [vmem:[#allocation5 + $0x50] sm:$0xff]  ;;  %v275_v18 = vld [vmem:[#allocation5 + $0x58] sm:$0xff]  ;;  %s806_s21 = sshll.u32 %s894_s26, 4  ;;  %s807_s21 = int_to_ptr.vmem [resolvable:$false] %s806_s21 }
  0x5f   : > { %624 = vmatprep.subr.bf16.mxu0 %v623_v5  ;;  %652 = vmatprep.subr.bf16.mxu1 %v623_v5  ;;  %v635_v16 = vpack.c.bf16 %v273_v15, %v272_v14  ;;  %v639_v19 = vpack.c.bf16 %v275_v18, %v274_v17  ;;  %v276_v20 = vld [vmem:[#allocation5 + $0x60] sm:$0xff]  ;;  %v277_v21 = vld [vmem:[#allocation5 + $0x68] sm:$0xff]  ;;  %v278_v23 = vld [vmem:[#allocation5 + $0x70] sm:$0xff]  ;;  %p804_p6 = pnand %p803_p4, %p1016_p10  ;;  %s808_s4 = scalar_lea.vmem %s807_s21, 2048 }
  0x60   : > { %607 = vmatprep.mubr.f32.mxu0 %v256_v9  ;;  %613 = vmatprep.mubr.f32.mxu1 %v260_v10  ;;  %v643_v22 = vpack.c.bf16 %v277_v21, %v276_v20  ;;  %v279_v24 = vld [vmem:[#allocation5 + $0x78] sm:$0xff]  ;;  %v257_v26 = vld [vmem:[%s1081_s19 + $0x8] sm:$0xff]  ;;  %v258_v28 = vld [vmem:[%s1081_s19 + $0x10] sm:$0xff]  ;;  %p809_p12 = scmp.lt.s32.totalorder %s1105_s10, %s807_s21  ;;  %p810_p11 = scmp.lt.s32.totalorder %s808_s4, %s802_s8 }
  0x61   : > { %v647_v25 = vpack.c.bf16 %v279_v24, %v278_v23  ;;  %v261_v27 = vld [vmem:[%s1081_s19 + $0x28] sm:$0xff]  ;;  %v262_v29 = vld [vmem:[%s1081_s19 + $0x30] sm:$0xff]  ;;  %v259_v30 = vld [vmem:[%s1081_s19 + $0x18] sm:$0xff]  ;;  %p805_p8 = pneg %p804_p6 }
  0x62   : > { %626 = vmatpush3.bf16.msra.mxu0 %v623_v5  ;;  %660 = vmatpush3.bf16.msra.mxu1 %v623_v5  ;;  %v263_v31 = vld [vmem:[%s1081_s19 + $0x38] sm:$0xff]  ;;  %v543_v32 = vld [vmem:[%s1161_s2] ss:$0 sm:$0xff]  ;;  %p811_p0 = por %p810_p11, %p809_p12 }
  0x63   : > { %628 = vmatprep.subr.bf16.mxu0 %v627_v8  ;;  %653 = vmatprep.subr.bf16.mxu1 %v627_v8 }
  0x64   : > { %p812_p5 = pnand %p811_p0, %p805_p8 }
  0x66   : > { %630 = vmatpush3.bf16.msra.mxu0 %v627_v8  ;;  %661 = vmatpush3.bf16.msra.mxu1 %v627_v8 }
  0x67   : > { %632 = vmatprep.subr.bf16.mxu0 %v631_v13  ;;  %654 = vmatprep.subr.bf16.mxu1 %v631_v13 }
  0x6a   : > { %634 = vmatpush3.bf16.msra.mxu0 %v631_v13  ;;  %662 = vmatpush3.bf16.msra.mxu1 %v631_v13 }
  0x6b   : > { %636 = vmatprep.subr.bf16.mxu0 %v635_v16  ;;  %655 = vmatprep.subr.bf16.mxu1 %v635_v16 }
  0x6e   : > { %638 = vmatpush3.bf16.msra.mxu0 %v635_v16  ;;  %663 = vmatpush3.bf16.msra.mxu1 %v635_v16 }
  0x6f   : > { %640 = vmatprep.subr.bf16.mxu0 %v639_v19  ;;  %656 = vmatprep.subr.bf16.mxu1 %v639_v19 }
  0x72   : > { %642 = vmatpush3.bf16.msra.mxu0 %v639_v19  ;;  %664 = vmatpush3.bf16.msra.mxu1 %v639_v19 }
  0x73   : > { %644 = vmatprep.subr.bf16.mxu0 %v643_v22  ;;  %657 = vmatprep.subr.bf16.mxu1 %v643_v22 }
  0x76   : > { %646 = vmatpush3.bf16.msra.mxu0 %v643_v22  ;;  %665 = vmatpush3.bf16.msra.mxu1 %v643_v22 }
  0x77   : > { %648 = vmatprep.subr.bf16.mxu0 %v647_v25  ;;  %658 = vmatprep.subr.bf16.mxu1 %v647_v25 }
  0x7a   : > { %650 = vmatpush3.bf16.msra.mxu0 %v647_v25  ;;  %666 = vmatpush3.bf16.msra.mxu1 %v647_v25 }
  0x7d   : > { %608 = vmatmul.mubr.f32.vlgmr.msra.gmra.mrb[0].mxu0 %v257_v26  ;;  %614 = vmatmul.mubr.f32.vlgmr.msra.gmra.mrb[0].mxu1 %v261_v27 }
  0x7e   : > { %610 = vmatprep.mubr.f32.mxu0 %v258_v28  ;;  %616 = vmatprep.mubr.f32.mxu1 %v262_v29 }
  0x81   : > { %611 = vmatmul.mubr.f32.gmra.mrb[2].mxu0 %v259_v30  ;;  %617 = vmatmul.mubr.f32.gmra.mrb[2].mxu1 %v263_v31 }
 0x150   : > { %v609_v33 = vpop.f32.mrb[0].mxu0  ;;  %v615_v34 = vpop.f32.mrb[0].mxu1 }
 0x151   : > { %v359_v35 = vadd.f32 %v609_v33, %v543_v32  ;;  %v379_v36 = vadd.f32 %v615_v34, %v543_v32  ;;  %v353_v37 = vpop.f32.mrb[1].mxu0  ;;  %v373_v38 = vpop.f32.mrb[1].mxu1 }
 0x152   : > { %v354_v39 = vadd.f32 %v543_v32, %v353_v37  ;;  %v374_v40 = vadd.f32 %v543_v32, %v373_v38 }
 0x153   : > { %393 = vst [vmem:[%s250_s24 + $0x8] sm:$0xff] %v359_v35  ;;  %397 = vst [vmem:[%s250_s24 + $0x28] sm:$0xff] %v379_v36 }
 0x154   : > { %392 = vst [vmem:[%s250_s24] sm:$0xff] %v354_v39  ;;  %396 = vst [vmem:[%s250_s24 + $0x20] sm:$0xff] %v374_v40  ;;  %v612_v41 = vpop.f32.mrb[2].mxu0  ;;  %v618_v42 = vpop.f32.mrb[2].mxu1 }
 0x155   : > { %v369_v43 = vadd.f32 %v612_v41, %v543_v32  ;;  %v389_v44 = vadd.f32 %v618_v42, %v543_v32  ;;  %v363_v45 = vpop.f32.mrb[3].mxu0  ;;  %v383_v46 = vpop.f32.mrb[3].mxu1 }
 0x156   : > { %v364_v47 = vadd.f32 %v543_v32, %v363_v45  ;;  %v384_v48 = vadd.f32 %v543_v32, %v383_v46 }
 0x157   : > { %395 = vst [vmem:[%s250_s24 + $0x18] sm:$0xff] %v369_v43  ;;  %399 = vst [vmem:[%s250_s24 + $0x38] sm:$0xff] %v389_v44 }
 0x158   : > { %394 = vst [vmem:[%s250_s24 + $0x10] sm:$0xff] %v364_v47  ;;  %398 = vst [vmem:[%s250_s24 + $0x30] sm:$0xff] %v384_v48 }
 0x159   : > { %815 = shalt.err (!%p812_p5)
}
 0x15a   : > { %s816_s6 = scalar_lea.hbm %s1110_s15, 1024  ;;  %s820_s19 = scalar_lea.hbm %s1162_s3, 2048 }
 0x15b   : > { %p817_p9 = scmp.ne.s32.totalorder %s1110_s15, %s816_s6  ;;  %p821_p3 = scmp.lt.u32.totalorder %s1110_s15, %s1162_s3 }
 0x15c   : > { %p822_p7 = scmp.lt.u32.totalorder %s820_s19, %s816_s6  ;;  %p824_p4 = scmp.lt.u32.totalorder %s816_s6, %s1110_s15 }
 0x15d   : > { %p818_p1 = pnand %p817_p9, %p1016_p10 }
 0x15e   : > { %p823_p13 = por %p822_p7, %p821_p3 }
 0x15f   : > { %p819_p2 = pneg %p818_p1 }
 0x160   : > { %p825_p6 = por %p824_p4, %p823_p13 }
 0x162   : > { %p826_p8 = pnand %p825_p6, %p819_p2 }
 0x164   : > { %829 = shalt.err (!%p826_p8)
}
 0x165   : > { %s895_s24 = smov 128   ;;  %s896_s11 = smov 8  }
 0x166   : > { %673 = dma.vmem_to_hbm [thread:$0]  (%p1016_p10), %s1105_s10, 1024, %s1110_s15, %s401_s25, %s895_s24, %s895_s24, %s896_s11  }
 0x167 PF: > { %s430_s9 = sand.u32 1, %s868_s12   ;;  %p1180_p12 = scmp.ne.s32.totalorder %s1170_s23, 0 }
 0x168   : > { %p1181_p11 = scmp.ge.s32.totalorder %s888_s17, 2  ;;  %s431_s18 = scalar_lea.sflag [#allocation4], %s430_s9 }
 0x16a   : > { %p684_p0 = pnand %p1181_p11, %p1180_p12 }
 0x16c   : > { %863 = dma.done.wait (!%p684_p0), %s431_s18, 1024  }
 0x16d   : > { %865 = vsyncadd (!%p684_p0), %s431_s18, 4294966272  ;;  %s20_s17 = sadd.s32 1, %s888_s17   ;;  %s1182_s12 = smov %s872_s13 }
 0x16e   : > { %p17_p5 = scmp.ge.s32.totalorder %s20_s17, 4   ;;  %s1183_s13 = smov %s876_s14 }
 0x16f   : > { %s1184_s14 = smov %s1025_s5  ;;  %s1185_s15 = smov %s884_s16 }
 0x170   : > { %s1186_s16 = smov %s1188_s28  ;;  %19 = sbr.rel (!%p17_p5) target bundleno = 7 (0x7), region = 85 }
 0x177   :  { %436 = vsyncpa [#allocation3], 1 }
 0x178   :  { %438 = vsyncpa [#allocation3 + $0x1], 1 }
 0x179   :  { %439 = vsyncpa [#allocation6], 1 }
 0x17a   :  { %440 = vsyncpa [#allocation4], 1 }
 0x17b   :  { %442 = vsyncpa [#allocation4 + $0x1], 1 }

</bundles_post_ra>
